<compile_context>
chip_gen: v7x
topology: tpu7x:2x2x1
jax: 0.10.0
libtpu: 0.0.40
codegen_flags: <defaults>
</compile_context>

<pallas_src>
import functools

import jax
import jax.numpy as jnp
from jax.experimental import pallas as pl
from jax.experimental.pallas import tpu as pltpu


def _lrelu(x, slope=0.2):
    return jnp.where(x >= 0, x, slope * x)


def _round_up(v, m):
    return ((v + m - 1) // m) * m


def _resnet_block_kernel(x_ref, mask_ref, w0_ref, b0_ref, w1_ref, b1_ref,
                         *rest, Wp, Lc, learned_shortcut):
    """One batch-chunk per grid step, everything in (channels, flat-spatial).

    x_ref    : (1, Cin, Lx)  bf16, spatially zero-padded images, row-major
               flattened (per image: Hp*Wp entries), zero tail.
    mask_ref : (1, Lc)       f32, 1.0 at flat positions that are valid output
               pixels, 0.0 at padding/garbage columns.
    w0_ref   : (Chid, 9*Cin) bf16 AdaFM-folded conv_0 weight (tap-major cols).
    b0_ref   : (Chid, 1)     f32 fused conv_0 bias.
    w1_ref   : (Cout, 9*Chid) bf16, b1_ref (Cout, 1) f32.
    ws_ref   : (Cout, Cin)   f32 1x1 shortcut weight (only if learned).
    out_ref  : (1, Cout, Lc) f32 lane-dense output slab.
    """
    if learned_shortcut:
        ws_ref, out_ref = rest
    else:
        (out_ref,) = rest

    # Tap (ky, kx) of a 3x3 conv on the row-major-flattened padded image is a
    # pure lane shift by ky*Wp + kx.
    shifts = tuple(ky * Wp + kx for ky in range(3) for kx in range(3))

    x = x_ref[0]                                   # (Cin, Lx) bf16
    xa = _lrelu(x)                                 # lrelu(0)=0 keeps padding 0

    # ---- conv_0: one (Chid, 9*Cin) @ (9*Cin, Lc) matmul, taps stacked on the
    # contraction/sublane axis (cheap vreg stacking of lane-shifted slices).
    a0 = jnp.concatenate([xa[:, s:s + Lc] for s in shifts], axis=0)
    h = jnp.dot(w0_ref[...], a0, preferred_element_type=jnp.float32)
    h = _lrelu(h + b0_ref[...]) * mask_ref[...]    # bias + lrelu_1, zero pads

    # ---- padded hidden activation, still flat & lane-dense: the 1-px spatial
    # zero padding is exactly a shift by Wp+1 plus the mask applied above.
    hb = h.astype(jnp.bfloat16)
    z = jnp.zeros((hb.shape[0], Wp + 1), jnp.bfloat16)
    hp = jnp.concatenate([z, hb, z], axis=1)       # (Chid, Lc + 2*(Wp+1))

    # ---- conv_1: one (Cout, 9*Chid) @ (9*Chid, Lc) matmul.
    a1 = jnp.concatenate([hp[:, s:s + Lc] for s in shifts], axis=0)
    d = jnp.dot(w1_ref[...], a1, preferred_element_type=jnp.float32)
    d = d + b1_ref[...]                            # (Cout, Lc) f32

    # ---- shortcut + residual: out = x_s + 0.1 * dx
    xc = x[:, Wp + 1: Wp + 1 + Lc]                 # raw (un-activated) centers
    if learned_shortcut:
        xs = jnp.dot(ws_ref[...], xc.astype(jnp.float32),
                     preferred_element_type=jnp.float32)   # 1x1 conv, f32
    else:
        xs = xc.astype(jnp.float32)                # Cin == Cout here
    out_ref[0] = (xs + 0.1 * d).astype(out_ref.dtype)


def resnet_block_style(x_nchw, params, *, fin, fout, fhidden=None,
                       num_chunks=None):
    """Forward pass of ResnetBlock_style. Input / output are NCHW float32."""
    if fhidden is None:
        fhidden = min(fin, fout)
    learned_shortcut = fin != fout
    N, C, H, W = x_nchw.shape
    assert C == fin
    Hp, Wp = H + 2, W + 2
    HpWp = Hp * Wp

    # At most 2 grid chunks: keeps both v7x TensorCores busy while adding only
    # one extra (cheap) step on single-TC v5e/v6e; batch folds into lanes.
    if num_chunks is None:
        num_chunks = 2 if N >= 2 else 1
    NB = -(-N // num_chunks)                       # images per chunk
    Np = NB * num_chunks

    L = NB * HpWp                                  # flat positions per chunk
    Lc = _round_up(L, 128)                         # lane-dense compute width
    Lx = _round_up(Lc + 2 * Wp + 2, 128)           # input width incl. tap slack

    # ---- input: NCHW -> zero-pad spatially -> per-chunk (Cin, flat) bf16.
    x = x_nchw.astype(jnp.float32)
    x_pad = jnp.pad(x, ((0, Np - N), (0, 0), (1, 1), (1, 1)))     # (Np,C,Hp,Wp)
    xf = x_pad.reshape(num_chunks, NB, fin, HpWp)
    xf = jnp.transpose(xf, (0, 2, 1, 3)).reshape(num_chunks, fin, L)
    xf = jnp.pad(xf, ((0, 0), (0, 0), (0, Lx - L))).astype(jnp.bfloat16)

    # ---- validity mask over the flat compute span (same for every chunk).
    p = jnp.arange(Lc)
    q = p % HpWp
    valid = (p < L) & ((q // Wp) < H) & ((q % Wp) < W)
    mask = valid.astype(jnp.float32)[None, :]                     # (1, Lc)

    # ---- fold AdaFM modulation + biases once, in XLA. PyTorch OIHW weights.
    w0m = params["conv0_w"] * params["adafm0_gamma"] + params["adafm0_beta"]
    w0 = jnp.transpose(w0m, (0, 2, 3, 1)).reshape(fhidden, 9 * fin)
    w0 = w0.astype(jnp.bfloat16)
    b0 = (params["conv0_b"] + params["adafm_b0"]).astype(jnp.float32)[:, None]

    w1m = params["conv1_w"] * params["adafm1_gamma"] + params["adafm1_beta"]
    w1 = jnp.transpose(w1m, (0, 2, 3, 1)).reshape(fout, 9 * fhidden)
    w1 = w1.astype(jnp.bfloat16)
    b1 = (params["conv1_b"] + params["adafm_b1"]).astype(jnp.float32)[:, None]

    args = [xf, mask, w0, b0, w1, b1]
    in_specs = [
        pl.BlockSpec((1, fin, Lx), lambda g: (g, 0, 0)),
        pl.BlockSpec((1, Lc), lambda g: (0, 0)),
        pl.BlockSpec((fhidden, 9 * fin), lambda g: (0, 0)),
        pl.BlockSpec((fhidden, 1), lambda g: (0, 0)),
        pl.BlockSpec((fout, 9 * fhidden), lambda g: (0, 0)),
        pl.BlockSpec((fout, 1), lambda g: (0, 0)),
    ]
    if learned_shortcut:
        ws = params["conv_s_w"][:, :, 0, 0].astype(jnp.float32)   # (fout, fin)
        args.append(ws)
        in_specs.append(pl.BlockSpec((fout, fin), lambda g: (0, 0)))

    kernel = functools.partial(_resnet_block_kernel, Wp=Wp, Lc=Lc,
                               learned_shortcut=learned_shortcut)

    flops = 2 * num_chunks * Lc * (9 * fin * fhidden + 9 * fhidden * fout
                                   + (fin * fout if learned_shortcut else 0))
    bytes_accessed = (xf.size * 2 + mask.size * 4 + w0.size * 2 + w1.size * 2
                      + b0.size * 4 + b1.size * 4
                      + num_chunks * fout * Lc * 4
                      + (fout * fin * 4 if learned_shortcut else 0))

    out_flat = pl.pallas_call(
        kernel,
        out_shape=jax.ShapeDtypeStruct((num_chunks, fout, Lc), jnp.float32),
        grid=(num_chunks,),
        in_specs=in_specs,
        out_specs=pl.BlockSpec((1, fout, Lc), lambda g: (g, 0, 0)),
        compiler_params=pltpu.CompilerParams(
            dimension_semantics=("parallel",)),
        cost_estimate=pl.CostEstimate(flops=int(flops), transcendentals=0,
                                      bytes_accessed=int(bytes_accessed)),
    )(*args)

    # ---- layout plumbing back to NCHW (wrapper side, lane-dense slab in HBM).
    out = out_flat[:, :, :L].reshape(num_chunks, fout, NB, Hp, Wp)
    out = out[:, :, :, :H, :W]
    out = jnp.transpose(out, (0, 2, 1, 3, 4)).reshape(Np, fout, H, W)
    return out[:N]


def init_params(key, fin, fout, fhidden):
    """Deterministic synthetic parameters with the module's shapes (PyTorch layout)."""
    ks = jax.random.split(key, 11)
    p = {
        "conv0_w": 0.1 * jax.random.normal(ks[0], (fhidden, fin, 3, 3), jnp.float32),
        "conv0_b": 0.1 * jax.random.normal(ks[1], (fhidden,), jnp.float32),
        "adafm0_gamma": 1.0 + 0.1 * jax.random.normal(ks[2], (fhidden, fin, 1, 1), jnp.float32),
        "adafm0_beta": 0.05 * jax.random.normal(ks[3], (fhidden, fin, 1, 1), jnp.float32),
        "adafm_b0": 0.05 * jax.random.normal(ks[4], (fhidden,), jnp.float32),
        "conv1_w": 0.1 * jax.random.normal(ks[5], (fout, fhidden, 3, 3), jnp.float32),
        "conv1_b": 0.1 * jax.random.normal(ks[6], (fout,), jnp.float32),
        "adafm1_gamma": 1.0 + 0.1 * jax.random.normal(ks[7], (fout, fhidden, 1, 1), jnp.float32),
        "adafm1_beta": 0.05 * jax.random.normal(ks[8], (fout, fhidden, 1, 1), jnp.float32),
        "adafm_b1": 0.05 * jax.random.normal(ks[9], (fout,), jnp.float32),
    }
    if fin != fout:
        p["conv_s_w"] = 0.1 * jax.random.normal(ks[10], (fout, fin, 1, 1), jnp.float32)
    return p


def reference_nchw(x, p, learned_shortcut):
    """Pure-JAX (XLA conv) reference matching the PyTorch forward, NCHW."""
    def conv(h, w, b, pad):
        out = jax.lax.conv_general_dilated(
            h, w, window_strides=(1, 1), padding=((pad, pad), (pad, pad)),
            dimension_numbers=("NCHW", "OIHW", "NCHW"))
        if b is not None:
            out = out + b[None, :, None, None]
        return out

    lrelu = lambda t: jnp.where(t >= 0, t, 0.2 * t)
    w0m = p["conv0_w"] * p["adafm0_gamma"] + p["adafm0_beta"]
    dx = conv(lrelu(x), w0m, p["conv0_b"] + p["adafm_b0"], 1)
    w1m = p["conv1_w"] * p["adafm1_gamma"] + p["adafm1_beta"]
    dx = conv(lrelu(dx), w1m, p["conv1_b"] + p["adafm_b1"], 1)
    xs = conv(x, p["conv_s_w"], None, 0) if learned_shortcut else x
    return xs + 0.1 * dx


if __name__ == "__main__":
    N, H, W = 2, 16, 16
    key = jax.random.PRNGKey(0)
    ok = True
    # Exercise both the learned (1x1 conv) and identity shortcut paths.
    for fin, fout in [(4, 8), (4, 4)]:
        fhidden = min(fin, fout)
        kx, kp = jax.random.split(jax.random.fold_in(key, fin * 100 + fout))
        x = jax.random.normal(kx, (N, fin, H, W), jnp.float32)
        params = init_params(kp, fin, fout, fhidden)

        out = resnet_block_style(x, params, fin=fin, fout=fout)
        out = jax.block_until_ready(out)

        ref = reference_nchw(x, params, fin != fout)
        if out.shape != (N, fout, H, W):
            ok = False
        # Tolerance loosened: activations + conv weights are bf16 (f32 accum).
        if not bool(jnp.allclose(out, ref, atol=2e-2, rtol=2e-2)):
            ok = False

    if not ok:
        raise SystemExit("Pallas kernel output mismatches JAX reference")
    print("KERNEL_OK")
</pallas_src>

<mosaic_0001>
module attributes {stable_mosaic.version = 11 : i64} {
  func.func @_resnet_block_kernel(%arg0: i32, %arg1: memref<1x4x512xbf16, #tpu.memory_space<vmem>>, %arg2: memref<1x384xf32, #tpu.memory_space<vmem>>, %arg3: memref<4x36xbf16, #tpu.memory_space<vmem>>, %arg4: memref<4x1xf32, #tpu.memory_space<vmem>>, %arg5: memref<8x36xbf16, #tpu.memory_space<vmem>>, %arg6: memref<8x1xf32, #tpu.memory_space<vmem>>, %arg7: memref<8x4xf32, #tpu.memory_space<vmem>>, %arg8: memref<1x8x384xf32, #tpu.memory_space<vmem>>) attributes {dimension_semantics = [#tpu.dimension_semantics<parallel>], iteration_bounds = array<i64: 2>, scalar_prefetch = 0 : i64, scratch_operands = 0 : i64, tpu.core_type = #tpu.core_type<tc>, window_params = [{transform_indices = @transform_0, window_bounds = array<i64: 1, 4, 512>}, {pipeline_mode = #tpu.pipeline_mode<synchronous>, transform_indices = @transform_1, window_bounds = array<i64: 1, 384>}, {pipeline_mode = #tpu.pipeline_mode<synchronous>, transform_indices = @transform_2, window_bounds = array<i64: 4, 36>}, {pipeline_mode = #tpu.pipeline_mode<synchronous>, transform_indices = @transform_3, window_bounds = array<i64: 4, 1>}, {pipeline_mode = #tpu.pipeline_mode<synchronous>, transform_indices = @transform_4, window_bounds = array<i64: 8, 36>}, {pipeline_mode = #tpu.pipeline_mode<synchronous>, transform_indices = @transform_5, window_bounds = array<i64: 8, 1>}, {pipeline_mode = #tpu.pipeline_mode<synchronous>, transform_indices = @transform_6, window_bounds = array<i64: 8, 4>}, {transform_indices = @transform_7, window_bounds = array<i64: 1, 8, 384>}]} {
    %c0 = arith.constant 0 : index
    %c0_0 = arith.constant 0 : index
    %c0_1 = arith.constant 0 : index
    %0 = vector.load %arg1[%c0, %c0_0, %c0_1] : memref<1x4x512xbf16, #tpu.memory_space<vmem>>, vector<1x4x512xbf16>
    %1 = vector.shape_cast %0 : vector<1x4x512xbf16> to vector<4x512xbf16>
    %cst = arith.constant 0.000000e+00 : bf16
    %2 = vector.broadcast %cst : bf16 to vector<4x512xbf16>
    %3 = arith.cmpf oge, %1, %2 : vector<4x512xbf16>
    %cst_2 = arith.constant 2.001950e-01 : bf16
    %4 = vector.broadcast %cst_2 : bf16 to vector<4x512xbf16>
    %5 = arith.mulf %4, %1 : vector<4x512xbf16>
    %6 = arith.select %3, %1, %5 : vector<4x512xi1>, vector<4x512xbf16>
    %7 = vector.extract_strided_slice %6 {offsets = [0, 0], sizes = [4, 384], strides = [1, 1]} : vector<4x512xbf16> to vector<4x384xbf16>
    %8 = vector.extract_strided_slice %6 {offsets = [0, 1], sizes = [4, 384], strides = [1, 1]} : vector<4x512xbf16> to vector<4x384xbf16>
    %9 = vector.extract_strided_slice %6 {offsets = [0, 2], sizes = [4, 384], strides = [1, 1]} : vector<4x512xbf16> to vector<4x384xbf16>
    %10 = vector.extract_strided_slice %6 {offsets = [0, 18], sizes = [4, 384], strides = [1, 1]} : vector<4x512xbf16> to vector<4x384xbf16>
    %11 = vector.extract_strided_slice %6 {offsets = [0, 19], sizes = [4, 384], strides = [1, 1]} : vector<4x512xbf16> to vector<4x384xbf16>
    %12 = vector.extract_strided_slice %6 {offsets = [0, 20], sizes = [4, 384], strides = [1, 1]} : vector<4x512xbf16> to vector<4x384xbf16>
    %13 = vector.extract_strided_slice %6 {offsets = [0, 36], sizes = [4, 384], strides = [1, 1]} : vector<4x512xbf16> to vector<4x384xbf16>
    %14 = vector.extract_strided_slice %6 {offsets = [0, 37], sizes = [4, 384], strides = [1, 1]} : vector<4x512xbf16> to vector<4x384xbf16>
    %15 = vector.extract_strided_slice %6 {offsets = [0, 38], sizes = [4, 384], strides = [1, 1]} : vector<4x512xbf16> to vector<4x384xbf16>
    %16 = tpu.concatenate %7, %8, %9, %10, %11, %12, %13, %14, %15 in 0 : vector<4x384xbf16>, vector<4x384xbf16>, vector<4x384xbf16>, vector<4x384xbf16>, vector<4x384xbf16>, vector<4x384xbf16>, vector<4x384xbf16>, vector<4x384xbf16>, vector<4x384xbf16> -> vector<36x384xbf16>
    %c0_3 = arith.constant 0 : index
    %c0_4 = arith.constant 0 : index
    %17 = vector.load %arg3[%c0_3, %c0_4] : memref<4x36xbf16, #tpu.memory_space<vmem>>, vector<4x36xbf16>
    %cst_5 = arith.constant dense<0.000000e+00> : vector<4x384xf32>
    %18 = tpu.matmul %17, %16, %cst_5 {dimension_numbers = #tpu.dot_dimension_numbers<[1], [0], [0], [1], [0, 0, 1, 1], [], []>} : vector<4x36xbf16>, vector<36x384xbf16>, vector<4x384xf32> -> vector<4x384xf32>
    %c0_6 = arith.constant 0 : index
    %c0_7 = arith.constant 0 : index
    %19 = vector.load %arg4[%c0_6, %c0_7] : memref<4x1xf32, #tpu.memory_space<vmem>>, vector<4x1xf32>
    %20 = vector.broadcast %19 : vector<4x1xf32> to vector<4x384xf32>
    %21 = arith.addf %18, %20 : vector<4x384xf32>
    %cst_8 = arith.constant 0.000000e+00 : f32
    %22 = vector.broadcast %cst_8 : f32 to vector<4x384xf32>
    %23 = arith.cmpf oge, %21, %22 : vector<4x384xf32>
    %cst_9 = arith.constant 2.000000e-01 : f32
    %24 = vector.broadcast %cst_9 : f32 to vector<4x384xf32>
    %25 = arith.mulf %24, %21 : vector<4x384xf32>
    %26 = arith.select %23, %21, %25 : vector<4x384xi1>, vector<4x384xf32>
    %c0_10 = arith.constant 0 : index
    %c0_11 = arith.constant 0 : index
    %27 = vector.load %arg2[%c0_10, %c0_11] : memref<1x384xf32, #tpu.memory_space<vmem>>, vector<1x384xf32>
    %28 = vector.broadcast %27 : vector<1x384xf32> to vector<4x384xf32>
    %29 = arith.mulf %26, %28 : vector<4x384xf32>
    %30 = arith.truncf %29 : vector<4x384xf32> to vector<4x384xbf16>
    %cst_12 = arith.constant 0.000000e+00 : bf16
    %31 = vector.broadcast %cst_12 : bf16 to vector<4x19xbf16>
    %32 = tpu.concatenate %31, %30, %31 in 1 : vector<4x19xbf16>, vector<4x384xbf16>, vector<4x19xbf16> -> vector<4x422xbf16>
    %33 = vector.extract_strided_slice %32 {offsets = [0, 0], sizes = [4, 384], strides = [1, 1]} : vector<4x422xbf16> to vector<4x384xbf16>
    %34 = vector.extract_strided_slice %32 {offsets = [0, 1], sizes = [4, 384], strides = [1, 1]} : vector<4x422xbf16> to vector<4x384xbf16>
    %35 = vector.extract_strided_slice %32 {offsets = [0, 2], sizes = [4, 384], strides = [1, 1]} : vector<4x422xbf16> to vector<4x384xbf16>
    %36 = vector.extract_strided_slice %32 {offsets = [0, 18], sizes = [4, 384], strides = [1, 1]} : vector<4x422xbf16> to vector<4x384xbf16>
    %37 = vector.extract_strided_slice %32 {offsets = [0, 19], sizes = [4, 384], strides = [1, 1]} : vector<4x422xbf16> to vector<4x384xbf16>
    %38 = vector.extract_strided_slice %32 {offsets = [0, 20], sizes = [4, 384], strides = [1, 1]} : vector<4x422xbf16> to vector<4x384xbf16>
    %39 = vector.extract_strided_slice %32 {offsets = [0, 36], sizes = [4, 384], strides = [1, 1]} : vector<4x422xbf16> to vector<4x384xbf16>
    %40 = vector.extract_strided_slice %32 {offsets = [0, 37], sizes = [4, 384], strides = [1, 1]} : vector<4x422xbf16> to vector<4x384xbf16>
    %41 = vector.extract_strided_slice %32 {offsets = [0, 38], sizes = [4, 384], strides = [1, 1]} : vector<4x422xbf16> to vector<4x384xbf16>
    %42 = tpu.concatenate %33, %34, %35, %36, %37, %38, %39, %40, %41 in 0 : vector<4x384xbf16>, vector<4x384xbf16>, vector<4x384xbf16>, vector<4x384xbf16>, vector<4x384xbf16>, vector<4x384xbf16>, vector<4x384xbf16>, vector<4x384xbf16>, vector<4x384xbf16> -> vector<36x384xbf16>
    %c0_13 = arith.constant 0 : index
    %c0_14 = arith.constant 0 : index
    %43 = vector.load %arg5[%c0_13, %c0_14] : memref<8x36xbf16, #tpu.memory_space<vmem>>, vector<8x36xbf16>
    %cst_15 = arith.constant dense<0.000000e+00> : vector<8x384xf32>
    %44 = tpu.matmul %43, %42, %cst_15 {dimension_numbers = #tpu.dot_dimension_numbers<[1], [0], [0], [1], [0, 0, 1, 1], [], []>} : vector<8x36xbf16>, vector<36x384xbf16>, vector<8x384xf32> -> vector<8x384xf32>
    %c0_16 = arith.constant 0 : index
    %c0_17 = arith.constant 0 : index
    %45 = vector.load %arg6[%c0_16, %c0_17] : memref<8x1xf32, #tpu.memory_space<vmem>>, vector<8x1xf32>
    %46 = vector.broadcast %45 : vector<8x1xf32> to vector<8x384xf32>
    %47 = arith.addf %44, %46 : vector<8x384xf32>
    %48 = vector.extract_strided_slice %1 {offsets = [0, 19], sizes = [4, 384], strides = [1, 1]} : vector<4x512xbf16> to vector<4x384xbf16>
    %c0_18 = arith.constant 0 : index
    %c0_19 = arith.constant 0 : index
    %49 = vector.load %arg7[%c0_18, %c0_19] : memref<8x4xf32, #tpu.memory_space<vmem>>, vector<8x4xf32>
    %50 = arith.extf %48 : vector<4x384xbf16> to vector<4x384xf32>
    %cst_20 = arith.constant dense<0.000000e+00> : vector<8x384xf32>
    %51 = tpu.matmul %49, %50, %cst_20 {dimension_numbers = #tpu.dot_dimension_numbers<[1], [0], [0], [1], [0, 0, 1, 1], [], []>} : vector<8x4xf32>, vector<4x384xf32>, vector<8x384xf32> -> vector<8x384xf32>
    %cst_21 = arith.constant 1.000000e-01 : f32
    %52 = vector.broadcast %cst_21 : f32 to vector<8x384xf32>
    %53 = arith.mulf %52, %47 : vector<8x384xf32>
    %54 = arith.addf %51, %53 : vector<8x384xf32>
    %c0_22 = arith.constant 0 : index
    %c0_23 = arith.constant 0 : index
    %c0_24 = arith.constant 0 : index
    %55 = vector.load %arg8[%c0_22, %c0_23, %c0_24] : memref<1x8x384xf32, #tpu.memory_space<vmem>>, vector<1x8x384xf32>
    %56 = vector.shape_cast %55 : vector<1x8x384xf32> to vector<8x384xf32>
    %57 = vector.shape_cast %54 : vector<8x384xf32> to vector<1x8x384xf32>
    tpu.vector_store %arg8[%c0_22, %c0_23, %c0_24], %57 {strides = array<i32>} : memref<1x8x384xf32, #tpu.memory_space<vmem>>, vector<1x8x384xf32>,
    return
  }
  func.func @transform_0(%arg0: i32) -> (i32, i32, i32) {
    %c0_i32 = arith.constant 0 : i32
    %c0_i32_0 = arith.constant 0 : i32
    %c0_i32_1 = arith.constant 0 : i32
    return %arg0, %c0_i32, %c0_i32_0 : i32, i32, i32
  }
  func.func @transform_1(%arg0: i32) -> (i32, i32) {
    %c0_i32 = arith.constant 0 : i32
    %c0_i32_0 = arith.constant 0 : i32
    %c0_i32_1 = arith.constant 0 : i32
    return %c0_i32, %c0_i32_0 : i32, i32
  }
  func.func @transform_2(%arg0: i32) -> (i32, i32) {
    %c0_i32 = arith.constant 0 : i32
    %c0_i32_0 = arith.constant 0 : i32
    %c0_i32_1 = arith.constant 0 : i32
    return %c0_i32, %c0_i32_0 : i32, i32
  }
  func.func @transform_3(%arg0: i32) -> (i32, i32) {
    %c0_i32 = arith.constant 0 : i32
    %c0_i32_0 = arith.constant 0 : i32
    %c0_i32_1 = arith.constant 0 : i32
    return %c0_i32, %c0_i32_0 : i32, i32
  }
  func.func @transform_4(%arg0: i32) -> (i32, i32) {
    %c0_i32 = arith.constant 0 : i32
    %c0_i32_0 = arith.constant 0 : i32
    %c0_i32_1 = arith.constant 0 : i32
    return %c0_i32, %c0_i32_0 : i32, i32
  }
  func.func @transform_5(%arg0: i32) -> (i32, i32) {
    %c0_i32 = arith.constant 0 : i32
    %c0_i32_0 = arith.constant 0 : i32
    %c0_i32_1 = arith.constant 0 : i32
    return %c0_i32, %c0_i32_0 : i32, i32
  }
  func.func @transform_6(%arg0: i32) -> (i32, i32) {
    %c0_i32 = arith.constant 0 : i32
    %c0_i32_0 = arith.constant 0 : i32
    %c0_i32_1 = arith.constant 0 : i32
    return %c0_i32, %c0_i32_0 : i32, i32
  }
  func.func @transform_7(%arg0: i32) -> (i32, i32, i32) {
    %c0_i32 = arith.constant 0 : i32
    %c0_i32_0 = arith.constant 0 : i32
    %c0_i32_1 = arith.constant 0 : i32
    return %arg0, %c0_i32, %c0_i32_0 : i32, i32, i32
  }
}

</mosaic_0001>

<bundles_post_ra>
// kernel: tpu_custom_call.1
= control target key start
LH: loop header
LB: loop body
LE: loop exit
PB: predicated region body
PF: predicated region fallthrough
CT: control target
= control target key end

     0   :  { %12 = vsyncpa [#allocation3], 0  ;;  %s1722_s0 = inlined_call_operand.vmem [shape: bf16[2,4,512], index: 0, kind: input, shape index: {}]   ;;  %s1723_s1 = inlined_call_operand.vmem [shape: f32[1,384], index: 1, kind: input, shape index: {}]   ;;  %s1724_s2 = inlined_call_operand.vmem [shape: bf16[4,36], index: 2, kind: input, shape index: {}]   ;;  %s1725_s3 = inlined_call_operand.vmem [shape: f32[4,1], index: 3, kind: input, shape index: {}]   ;;  %s1726_s4 = inlined_call_operand.vmem [shape: bf16[8,36], index: 4, kind: input, shape index: {}]   ;;  %s1727_s5 = inlined_call_operand.vmem [shape: f32[8,1], index: 5, kind: input, shape index: {}]   ;;  %s1728_s6 = inlined_call_operand.vmem [shape: f32[8,4], index: 6, kind: input, shape index: {}]   ;;  %s1729_s7 = inlined_call_operand.hbm [shape: f32[2,8,384], index: 7, kind: output, shape index: {}]  }
   0x1   :  { %14 = vsyncpa [#allocation3 + $0x1], 0  ;;  %s1350_s24 = smov 0   ;;  %s1352_s25 = smov 0  }
   0x2   :  { %s1354_s26 = smov 0   ;;  %s1356_s27 = smov 0  }
   0x3 LB: > { %s1371_s28 = sadd.s32 4294967295, %s1294_s27   ;;  %s1110_s29 = sadd.s32 4294967294, %s1294_s27   ;;  %s1294_s27 = sphi %s1356_s27, %s1737_s27   ;;  %s1290_s26 = sphi %s1354_s26, %s1736_s26   ;;  %s1286_s25 = sphi %s1352_s25, %s1735_s25   ;;  %s1282_s24 = sphi %s1350_s24, %s1734_s24  }
   0x4   : > { %s1375_s30 = sadd.s32 1, %s1294_s27   ;;  %s179_s8 = sadd.s32 1, %s1290_s26 }
   0x5   : > { %s176_s9 = ssub.s32 %s1294_s27, %s1375_s30  ;;  %p189_p0 = scmp.ne.s32.totalorder %s1290_s26, %s1286_s25 }
   0x6   : > { %p177_p1 = scmp.eq.s32.totalorder %s176_s9, 0  ;;  %p190_p2 = scmp.eq.s32.totalorder %s1371_s28, 1 }
   0x7   : > { %p195_p3 = scmp.ne.s32.totalorder %s1286_s25, %s1282_s24  ;;  %p196_p4 = scmp.eq.s32.totalorder %s1110_s29, 1 }
   0x8   : > { %s1386_s10 = scalar_select %p177_p1, %s1290_s26, %s179_s8  }
   0x9   : > { %p1388_p5 = por %p190_p2, %p189_p0  ;;  %p1392_p6 = por %p196_p4, %p195_p3 }
   0xa   : > { %p1113_p7 = scmp.ge.s32.totalorder %s1294_s27, 1  ;;  %p240_p8 = scmp.lt.s32.totalorder %s1294_s27, 3 }
   0xc   : > { %p241_p9 = pnand %p1113_p7, %p240_p8 }
   0xd   : > { %p272_p10 = scmp.lt.s32.totalorder (!%p241_p9), %s1371_s28, 1  ;;  %v288_v0 = vlaneseq (!%p241_p9)  ;;  %v1296_v1 = vmov (!%p241_p9), 1983009808   ;;  %s1297_s18 = smov (!%p241_p9), 126   ;;  %v1300_v17 = vmov (!%p241_p9), 0.0   ;;  %v1305_v21 = vmov (!%p241_p9), 0  }
   0xe   : > { %244 = sbr.rel (%p241_p9) target bundleno = 966 (0x3c6), region = 48  ;;  %v286_v2 = vunpack.c.l.s4 (!%p241_p9), %v1296_v1  ;;  %s1298_s19 = smov (!%p241_p9), 127   ;;  %1141 = vmatprep.subr.bf16.mxu1 (!%p241_p9), %v1300_v17  ;;  %512 = vmatprep.mubr.bf16.mxu0 (!%p241_p9), %v1305_v21  ;;  %vm1730_vm1 = vmmov (!%p241_p9), 0   ;;  %v461_v22 = vld [vmem:[%s1725_s3] sm:$0xf] (!%p241_p9)  ;;  %vm317_vm2 = vcmask (!%p241_p9), 1039360  }
   0xf   : > { %v1400_v3 = vshrl.u32 (!%p241_p9), %v288_v0, 7  ;;  %s1299_s20 = smov (!%p241_p9), 110   ;;  %s1301_s21 = smov (!%p241_p9), 109   ;;  %1147 = vmatprep.mubr.msk.bf16.mxu1 (!%p241_p9), %vm1730_vm1, %v1300_v17  ;;  %1220 = vset.pattern.permute.xlu0 (!%p241_p9), %v1305_v21  ;;  %vm344_vm3 = vcmask (!%p241_p9), 900096   ;;  %vm331_vm4 = vcmask (!%p241_p9), 1031168   ;;  %vm409_vm5 = vcmask (!%p241_p9), 1041408  }
  0x10   : > { %v287_v4 = vunpack.c.0.s8 (!%p241_p9), %v286_v2  ;;  %s1302_s22 = smov (!%p241_p9), 108   ;;  %s1303_s23 = smov (!%p241_p9), 92   ;;  %1231 = vset.pattern.permute.xlu1 (!%p241_p9), %v1305_v21  ;;  %vm426_vm6 = vcmask (!%p241_p9), 1045504   ;;  %vm419_vm7 = vcmask (!%p241_p9), 1043456   ;;  %vm369_vm8 = vcmask (!%p241_p9), 883712  }
  0x11   : > { %s1304_s29 = smov (!%p241_p9), 91   ;;  %s1307_s8 = smov (!%p241_p9), 90   ;;  %vm381_vm9 = vcmask (!%p241_p9), 752640   ;;  %vm357_vm10 = vcmask (!%p241_p9), 891904   ;;  %vm393_vm11 = vcmask (!%p241_p9), 744448   ;;  %vm405_vm12 = vcmask (!%p241_p9), 736256  }
  0x12   : > { %v290_v6 = vsub.s32 (!%p241_p9), %v287_v4, %v1400_v3  ;;  %vm467_vm13 = vcmask (!%p241_p9), 293888   ;;  %s1308_s9 = smov (!%p241_p9), 19  }
  0x15   : > { %s273_s13 = scalar_select %p272_p10, %s1371_s28, 1 }
  0x17   : > { %s1130_s14 = sshll.u32 %s273_s13, 3  ;;  %s1167_s13 = smul.u32 384, %s1371_s28 }
  0x18   : > { %s276_s17 = scalar_lea.vmem %s1722_s0, %s1130_s14 }
  0x19   : > { %v1405_v5 = vld [vmem:[%s276_s17] sm:$0xff] }
  0x1a   : > { %vm280_vm0 = vcmp.ge.bf16.partialorder %v1405_v5, 0  ;;  %v281_v7 = vmul.bf16 1045249613, %v1405_v5 }
  0x1c   : > { %v282_v8 = vsel %vm280_vm0, %v1405_v5, %v281_v7 }
  0x1d   : > { %v1411_v9 = vrot.slane %v282_v8, %v290_v6  ;;  %v300_v10 = vcombine.low %v282_v8, %v282_v8  ;;  %v284_v14 = vcombine.high %v282_v8, %v282_v8 }
  0x1f   : > { %325 = vrot.lane.b32.xlu1 %v1411_v9, %s1297_s18  ;;  %313 = vrot.lane.b32.xlu0 %v1411_v9, %s1298_s19  ;;  %v307_v11 = vrot.slane %v300_v10, %v290_v6  ;;  %v321_v12 = vcombine.low %v1411_v9, %v1411_v9  ;;  %v1423_v13 = vcombine.high %v1411_v9, %v1411_v9 }
  0x20   : > { %v1428_v16 = vrot.slane %v284_v14, %v290_v6 }
  0x21   : > { %v308_v15 = vcombine.high %v307_v11, %v307_v11  ;;  %v335_v19 = vcombine.low %v307_v11, %v307_v11 }
  0x22   : > { %v322_v18 = vcombine.low %v1428_v16, %v1428_v16  ;;  %v348_v20 = vcombine.high %v1428_v16, %v1428_v16 }
  0x23   : > { %309 = vrot.lane.b32.xlu1 %v307_v11, %s1298_s19  ;;  %323 = vrot.lane.b32.xlu0 %v321_v12, %s1297_s18 }
  0x27   : > { %340 = vrot.lane.b32.xlu0 %v321_v12, %s1299_s20  ;;  %315 = vrot.lane.b32.xlu1 %v1423_v13, %s1298_s19 }
  0x2b   : > { %311 = vrot.lane.b32.xlu0 %v308_v15, %s1298_s19  ;;  %338 = vrot.lane.b32.xlu1 %v307_v11, %s1299_s20 }
  0x2f   : > { %329 = vrot.lane.b32.xlu1 %v1428_v16, %s1297_s18  ;;  %327 = vrot.lane.b32.xlu0 %v322_v18, %s1297_s18 }
  0x33   : > { %342 = vrot.lane.b32.xlu1 %v1411_v9, %s1299_s20  ;;  %336 = vrot.lane.b32.xlu0 %v335_v19, %s1299_s20 }
  0x37   : > { %353 = vrot.lane.b32.xlu1 %v1428_v16, %s1301_s21  ;;  %351 = vrot.lane.b32.xlu0 %v1423_v13, %s1301_s21 }
  0x3b   : > { %365 = vrot.lane.b32.xlu1 %v1411_v9, %s1302_s22  ;;  %363 = vrot.lane.b32.xlu0 %v308_v15, %s1302_s22 }
  0x3f   : > { %361 = vrot.lane.b32.xlu1 %v307_v11, %s1302_s22  ;;  %349 = vrot.lane.b32.xlu0 %v1411_v9, %s1301_s21 }
  0x43   : > { %377 = vrot.lane.b32.xlu1 %v322_v18, %s1303_s23  ;;  %375 = vrot.lane.b32.xlu0 %v1411_v9, %s1303_s23 }
  0x47   : > { %367 = vrot.lane.b32.xlu1 %v1423_v13, %s1302_s22  ;;  %355 = vrot.lane.b32.xlu0 %v348_v20, %s1301_s21 }
  0x4b   : > { %387 = vrot.lane.b32.xlu1 %v307_v11, %s1304_s29  ;;  %373 = vrot.lane.b32.xlu0 %v321_v12, %s1303_s23 }
  0x4f   : > { %379 = vrot.lane.b32.xlu1 %v1428_v16, %s1303_s23  ;;  %389 = vrot.lane.b32.xlu0 %v321_v12, %s1304_s29 }
  0x53   : > { %391 = vrot.lane.b32.xlu1 %v1411_v9, %s1304_s29  ;;  %385 = vrot.lane.b32.xlu0 %v335_v19, %s1304_s29 }
  0x57   : > { %399 = vrot.lane.b32.xlu1 %v1423_v13, %s1307_s8  ;;  %397 = vrot.lane.b32.xlu0 %v1411_v9, %s1307_s8 }
  0x5b   : > { %403 = vrot.lane.b32.xlu1 %v348_v20, %s1307_s8  ;;  %401 = vrot.lane.b32.xlu0 %v1428_v16, %s1307_s8 }
  0x5f   : > { %464 = vperm.xlu0 %1220, %v461_v22  }
  0x91   : > { %v326_v23 = vpop.permute.xlu1 %325  ;;  %v314_v24 = vpop.permute.xlu0 %313 }
  0x95   : > { %v310_v25 = vpop.permute.xlu1 %309  ;;  %v324_v26 = vpop.permute.xlu0 %323 }
  0x96   : > { %v332_v43 = vsel %vm331_vm4, %v324_v26, %v326_v23 }
  0x99   : > { %v341_v27 = vpop.permute.xlu0 %340  ;;  %v316_v28 = vpop.permute.xlu1 %315 }
  0x9a   : > { %v320_v35 = vsel %vm317_vm2, %v314_v24, %v316_v28 }
  0x9b   : > { %v418_v44 = vsel %vm409_vm5, %v1428_v16, %v320_v35 }
  0x9d   : > { %v312_v29 = vpop.permute.xlu0 %311  ;;  %v339_v30 = vpop.permute.xlu1 %338 }
  0x9e   : > { %v319_v31 = vsel %vm317_vm2, %v312_v29, %v314_v24  ;;  %v318_v32 = vsel %vm317_vm2, %v310_v25, %v312_v29  ;;  %v346_v39 = vsel %vm344_vm3, %v339_v30, %v341_v27 }
  0x9f   : > { %v415_v36 = vsel %vm409_vm5, %v1423_v13, %v319_v31  ;;  %v412_v38 = vsel %vm409_vm5, %v1411_v9, %v318_v32 }
  0xa0   : > { %v421_v49 = vsel %vm419_vm7, %v412_v38, %v332_v43  ;;  %v570_v43 = vld [vmem:[%s1723_s1] sm:$0x7] }
  0xa1   : > { %v330_v33 = vpop.permute.xlu1 %329  ;;  %v328_v34 = vpop.permute.xlu0 %327 }
  0xa2   : > { %v333_v37 = vsel %vm331_vm4, %v326_v23, %v328_v34  ;;  %v334_v40 = vsel %vm331_vm4, %v328_v34, %v330_v33 }
  0xa3   : > { %v423_v41 = vsel %vm419_vm7, %v415_v36, %v333_v37  ;;  %v425_v50 = vsel %vm419_vm7, %v418_v44, %v334_v40  ;;  %v578_v44 = vsub.s32 1, %v1400_v3 }
  0xa4   : > { %v431_v42 = vsel %vm426_vm6, %v423_v41, %v346_v39  ;;  %v460_v39 = vld [vmem:[%s1724_s2] sm:$0x3]  ;;  %v582_v41 = vsub.s32 2, %v1400_v3 }
  0xa5   : > { %v343_v45 = vpop.permute.xlu1 %342  ;;  %480 = vmatprep.subr.bf16.mxu0 %v431_v42  ;;  %v337_v46 = vpop.permute.xlu0 %336  ;;  %v574_v42 = vsub.s32 0, %v1400_v3 }
  0xa6   : > { %v347_v47 = vsel %vm344_vm3, %v341_v27, %v343_v45  ;;  %v345_v48 = vsel %vm344_vm3, %v337_v46, %v339_v30 }
  0xa7   : > { %v428_v51 = vsel %vm426_vm6, %v421_v49, %v345_v48  ;;  %v434_v52 = vsel %vm426_vm6, %v425_v50, %v347_v47 }
  0xa8   : > { %481 = vmatpush1.bf16.msra.mxu0 %v428_v51  ;;  %1142 = vmatpush3.bf16.msra.mxu1 %v434_v52 }
  0xa9   : > { %v354_v53 = vpop.permute.xlu1 %353  ;;  %v352_v54 = vpop.permute.xlu0 %351  ;;  %1143 = vmatprep.subr.bf16.mxu1 %v1300_v17 }
  0xaa   : > { %v359_v4 = vsel %vm357_vm10, %v352_v54, %v354_v53 }
  0xad   : > { %v366_v55 = vpop.permute.xlu1 %365  ;;  %v364_v56 = vpop.permute.xlu0 %363 }
  0xae   : > { %v371_v1 = vsel %vm369_vm8, %v364_v56, %v366_v55 }
  0xaf   : > { %v441_v6 = vsel %vm409_vm5, %v359_v4, %v371_v1 }
  0xb1   : > { %v362_v57 = vpop.permute.xlu1 %361  ;;  %v350_v58 = vpop.permute.xlu0 %349 }
  0xb2   : > { %v370_v7 = vsel %vm369_vm8, %v362_v57, %v364_v56  ;;  %v358_v8 = vsel %vm357_vm10, %v350_v58, %v352_v54  ;;  %v575_v54 = vrot.slane %v570_v43, %v574_v42 }
  0xb3   : > { %v438_v19 = vsel %vm409_vm5, %v358_v8, %v370_v7 }
  0xb5   : > { %v378_v59 = vpop.permute.xlu1 %377  ;;  %v376_v60 = vpop.permute.xlu0 %375 }
  0xb6   : > { %v383_v2 = vsel %vm381_vm9, %v376_v60, %v378_v59 }
  0xb7   : > { %v448_v14 = vsel %vm419_vm7, %v441_v6, %v383_v2 }
  0xb9   : > { %v368_v61 = vpop.permute.xlu1 %367  ;;  %v356_v62 = vpop.permute.xlu0 %355 }
  0xba   : > { %v372_v11 = vsel %vm369_vm8, %v366_v55, %v368_v61  ;;  %v360_v12 = vsel %vm357_vm10, %v354_v53, %v356_v62  ;;  %v583_v53 = vrot.slane %v570_v43, %v582_v41 }
  0xbb   : > { %v444_v20 = vsel %vm409_vm5, %v360_v12, %v372_v11 }
  0xbd   : > { %v388_v63 = vpop.permute.xlu1 %387  ;;  %v374_v0 = vpop.permute.xlu0 %373 }
  0xbe   : > { %v382_v15 = vsel %vm381_vm9, %v374_v0, %v376_v60 }
  0xbf   : > { %v446_v26 = vsel %vm419_vm7, %v438_v19, %v382_v15 }
  0xc1   : > { %v380_v9 = vpop.permute.xlu1 %379  ;;  %v390_v10 = vpop.permute.xlu0 %389 }
  0xc2   : > { %v395_v13 = vsel %vm393_vm11, %v388_v63, %v390_v10  ;;  %v384_v16 = vsel %vm381_vm9, %v378_v59, %v380_v9  ;;  %v579_v59 = vrot.slane %v570_v43, %v578_v44 }
  0xc3   : > { %v455_v18 = vsel %vm426_vm6, %v448_v14, %v395_v13  ;;  %v450_v27 = vsel %vm419_vm7, %v444_v20, %v384_v16 }
  0xc4   : > { %482 = vmatprep.subr.bf16.mxu0 %v455_v18 }
  0xc5   : > { %v392_v22 = vpop.permute.xlu1 %391  ;;  %v386_v23 = vpop.permute.xlu0 %385 }
  0xc6   : > { %v396_v24 = vsel %vm393_vm11, %v390_v10, %v392_v22  ;;  %v394_v25 = vsel %vm393_vm11, %v386_v23, %v388_v63 }
  0xc7   : > { %v452_v28 = vsel %vm426_vm6, %v446_v26, %v394_v25  ;;  %v458_v29 = vsel %vm426_vm6, %v450_v27, %v396_v24 }
  0xc8   : > { %483 = vmatpush1.bf16.msra.mxu0 %v452_v28  ;;  %1144 = vmatpush3.bf16.msra.mxu1 %v458_v29  ;;  %v861_v28 = vunpack.c.l.bf16 %v1405_v5  ;;  %v862_v29 = vunpack.c.h.bf16 %v1405_v5  ;;  %v761_v5 = vld [vmem:[%s1727_s5] sm:$0xff] }
  0xc9   : > { %v400_v30 = vpop.permute.xlu1 %399  ;;  %v398_v31 = vpop.permute.xlu0 %397  ;;  %1145 = vmatprep.subr.bf16.mxu1 %v1300_v17 }
  0xca   : > { %v406_v32 = vsel %vm405_vm12, %v398_v31, %v400_v30  ;;  %v869_v31 = vcombine.high %v862_v29, %v862_v29 }
  0xcb   : > { %v472_v37 = vsel %vm409_vm5, %v406_v32, 0 }
  0xcd   : > { %v404_v33 = vpop.permute.xlu1 %403  ;;  %v402_v34 = vpop.permute.xlu0 %401 }
  0xce   : > { %v407_v35 = vsel %vm405_vm12, %v400_v30, %v402_v34  ;;  %v408_v36 = vsel %vm405_vm12, %v402_v34, %v404_v33  ;;  %v868_v30 = vcombine.high %v861_v28, %v861_v28  ;;  %v1226_v33 = vpack.i.bf16 %v869_v31, %v861_v28 }
  0xcf   : > { %1116 = vmatprep.subr.msk.bf16.mxu0 %vm409_vm5, %v407_v35  ;;  %v478_v38 = vsel %vm409_vm5, %v408_v36, 0 }
  0xd0   : > { %485 = vmatpush1.bf16.msra.mxu0 %v472_v37  ;;  %1146 = vmatpush3.bf16.msra.mxu1 %v478_v38  ;;  %v1221_v32 = vpack.i.bf16 %v862_v29, %v868_v30 }
  0xd1   : > { %1151 = vmatprep.subr.bf16.mxu1 %v1300_v17 }
  0xd3   : > { %1117 = vmatmul.mubr.msk.bf16.vlgmr.msra.gmra.mrb[0].mxu0 %vm467_vm13, %v460_v39  ;;  %1148 = vmatmul.mubr.msk.bf16.vlgmr.msra.gmra.mrb[0].mxu1 %vm467_vm13, %v460_v39 }
  0xd4   : > { %811 = vmatprep.mubr.bf16.mxu0 %v1305_v21  ;;  %1157 = vmatprep.mubr.msk.bf16.mxu1 %vm1730_vm1, %v1300_v17  ;;  %vm602_vm1 = vcmask 154624  }
  0xde   : > { %v465_v40 = vpop.permute.xlu0 %464 }
 0x1a6   : > { %v514_v45 = vpop.f32.mrb[0].mxu0  ;;  %v555_v46 = vpop.f32.mrb[0].mxu1 }
 0x1a7   : > { %v515_v47 = vadd.f32 %v514_v45, %v465_v40  ;;  %v556_v48 = vadd.f32 %v555_v46, %v465_v40  ;;  %v516_v49 = vpop.f32.mrb[1].mxu0  ;;  %v1149_v21 = vpop.f32.mrb[1].mxu1 }
 0x1a8   : > { %v517_v50 = vadd.f32 %v516_v49, %v465_v40  ;;  %v558_v51 = vpop.f32.mrb[2].mxu1  ;;  %v518_v52 = vpop.f32.mrb[2].mxu0 }
 0x1a9   : > { %v564_v55 = vmul.f32 0.2, %v515_v47  ;;  %v566_v56 = vmul.f32 0.2, %v556_v48  ;;  %v1150_v57 = vpop.f32.mrb[3].mxu1  ;;  %v519_v58 = vpop.f32.mrb[3].mxu0 }
 0x1aa   : > { %vm562_vm14 = vcmp.ge.f32.partialorder %v517_v50, 0.0  ;;  %v565_v60 = vmul.f32 0.2, %v517_v50  ;;  %vm563_vm15 = vcmp.ge.f32.partialorder %v556_v48, 0.0  ;;  %vm561_vm0 = vcmp.ge.f32.partialorder %v515_v47, 0.0 }
 0x1ab   : > { %v569_v3 = vsel %vm563_vm15, %v556_v48, %v566_v56  ;;  %v567_v61 = vsel %vm561_vm0, %v515_v47, %v564_v55 }
 0x1ac   : > { %v568_v62 = vsel %vm562_vm14, %v517_v50, %v565_v60  ;;  %v589_v63 = vmul.f32 %v583_v53, %v569_v3  ;;  %v587_v0 = vmul.f32 %v575_v54, %v567_v61 }
 0x1ad   : > { %v588_v4 = vmul.f32 %v579_v59, %v568_v62 }
 0x1ae   : > { %v592_v1 = vpack.c.bf16 %v589_v63, %v589_v63  ;;  %v590_v2 = vpack.c.bf16 %v587_v0, %v587_v0 }
 0x1af   : > { %v591_v6 = vpack.c.bf16 %v588_v4, %v588_v4 }
 0x1b0   : > { %600 = vrot.lane.b32.xlu0 %v592_v1, %s1308_s9  ;;  %596 = vrot.lane.b32.xlu1 %v590_v2, %s1308_s9 }
 0x1b4   : > { %598 = vrot.lane.b32.xlu1 %v591_v6, %s1308_s9  ;;  %s1678_s9 = scalar_lea.hbm %s1729_s7, %s1167_s13 }
 0x222   : > { %v601_v7 = vpop.permute.xlu0 %600  ;;  %v597_v8 = vpop.permute.xlu1 %596 }
 0x223   : > { %v610_v9 = vsel %vm602_vm1, %v601_v7, 0  ;;  %v1551_v11 = vsel %vm602_vm1, 0, %v597_v8 }
 0x224   : > { %664 = vrot.lane.b32.xlu1 %v610_v9, %s1301_s21  ;;  %v616_v10 = vrot.slane %v610_v9, 6  ;;  %v631_v13 = vrot.slane %v610_v9, 4  ;;  %v646_v15 = vrot.slane %v610_v9, 2  ;;  %v613_v16 = vrot.slane %v1551_v11, 6 }
 0x225   : > { %v628_v18 = vrot.slane %v1551_v11, 4  ;;  %v643_v19 = vrot.slane %v1551_v11, 2 }
 0x226   : > { %623 = vrot.lane.b32.xlu0 %v616_v10, %s1298_s19  ;;  %v599_v12 = vpop.permute.xlu1 %598 }
 0x227   : > { %v1557_v14 = vsel %vm602_vm1, %v597_v8, %v599_v12  ;;  %v604_v20 = vsel %vm602_vm1, %v599_v12, %v601_v7  ;;  %vm1733_vm1 = vmmov 0  }
 0x228   : > { %658 = vrot.lane.b32.xlu1 %v1551_v11, %s1301_s21  ;;  %v614_v22 = vrot.slane %v1557_v14, 6  ;;  %v615_v23 = vrot.slane %v604_v20, 6  ;;  %v630_v24 = vrot.slane %v604_v20, 4  ;;  %v629_v25 = vrot.slane %v1557_v14, 4 }
 0x229   : > { %v645_v26 = vrot.slane %v604_v20, 2  ;;  %v644_v27 = vrot.slane %v1557_v14, 2 }
 0x22a   : > { %638 = vrot.lane.b32.xlu0 %v631_v13, %s1297_s18 }
 0x22c   : > { %660 = vrot.lane.b32.xlu1 %v1557_v14, %s1301_s21 }
 0x22e   : > { %653 = vrot.lane.b32.xlu0 %v646_v15, %s1299_s20 }
 0x230   : > { %617 = vrot.lane.b32.xlu1 %v613_v16, %s1298_s19 }
 0x232   : > { %675 = vrot.lane.b32.xlu0 %v616_v10, %s1302_s22 }
 0x234   : > { %632 = vrot.lane.b32.xlu1 %v628_v18, %s1297_s18 }
 0x236   : > { %686 = vrot.lane.b32.xlu0 %v631_v13, %s1303_s23 }
 0x238   : > { %647 = vrot.lane.b32.xlu1 %v643_v19, %s1299_s20 }
 0x23a   : > { %697 = vrot.lane.b32.xlu0 %v646_v15, %s1304_s29 }
 0x23c   : > { %680 = vrot.lane.b32.xlu1 %v628_v18, %s1303_s23 }
 0x23e   : > { %662 = vrot.lane.b32.xlu0 %v604_v20, %s1301_s21 }
 0x240   : > { %691 = vrot.lane.b32.xlu1 %v643_v19, %s1304_s29 }
 0x242   : > { %669 = vrot.lane.b32.xlu0 %v613_v16, %s1302_s22 }
 0x244   : > { %619 = vrot.lane.b32.xlu1 %v614_v22, %s1298_s19 }
 0x246   : > { %621 = vrot.lane.b32.xlu0 %v615_v23, %s1298_s19  ;;  %s1309_s19 = smov [#allocation2]  }
 0x248   : > { %636 = vrot.lane.b32.xlu1 %v630_v24, %s1297_s18 }
 0x24a   : > { %634 = vrot.lane.b32.xlu0 %v629_v25, %s1297_s18 }
 0x24c   : > { %651 = vrot.lane.b32.xlu1 %v645_v26, %s1299_s20 }
 0x24e   : > { %649 = vrot.lane.b32.xlu0 %v644_v27, %s1299_s20  ;;  %s1236_s20 = sshll.u32 %s1309_s19, 4  ;;  %s1237_s20 = int_to_ptr.vmem [resolvable:$false] %s1236_s20 }
 0x250   : > { %671 = vrot.lane.b32.xlu1 %v614_v22, %s1302_s22 }
 0x252   : > { %673 = vrot.lane.b32.xlu0 %v615_v23, %s1302_s22 }
 0x254   : > { %682 = vrot.lane.b32.xlu1 %v629_v25, %s1303_s23 }
 0x256   : > { %684 = vrot.lane.b32.xlu0 %v630_v24, %s1303_s23 }
 0x258   : > { %695 = vrot.lane.b32.xlu1 %v645_v26, %s1304_s29 }
 0x25a   : > { %693 = vrot.lane.b32.xlu0 %v644_v27, %s1304_s29  ;;  %s269_s29 = sand.u32 1, %s1286_s25  }
 0x25b   : > { %s1037_s28 = scalar_lea.sflag [#allocation3], %s269_s29 }
 0x25c   : > { %702 = vrot.lane.b32.xlu1 %v1551_v11, %s1307_s8 }
 0x25e   : > { %704 = vrot.lane.b32.xlu0 %v1557_v14, %s1307_s8 }
 0x260   : > { %706 = vrot.lane.b32.xlu1 %v604_v20, %s1307_s8 }
 0x262   : > { %708 = vrot.lane.b32.xlu0 %v610_v9, %s1307_s8  ;;  %s1166_s8 = smul.u32 24, %s269_s29 }
 0x264   : > { %1222 = vrot.lane.b32.xlu1 %v1221_v32, %s1301_s21  ;;  %s271_s14 = scalar_lea.vmem [#allocation2], %s1166_s8 }
 0x265   : > { %s1051_s15 = sshll.u32 %s271_s14, 4  ;;  %s1680_s15 = int_to_ptr.vmem [resolvable:$true] %s1051_s15 }
 0x266   : > { %1227 = vrot.lane.b32.xlu0 %v1226_v33, %s1301_s21  ;;  %s1232_s18 = scalar_lea.vmem %s1680_s15, 384  ;;  %s1238_s21 = scalar_lea.vmem %s1237_s20, 768 }
 0x267   : > { %p1233_p11 = scmp.ne.s32.totalorder %s1680_s15, %s1232_s18  ;;  %p1239_p0 = scmp.lt.s32.totalorder %s1680_s15, %s1237_s20 }
 0x268   : > { %764 = vperm.xlu1 %1231, %v761_v5   ;;  %p1240_p1 = scmp.lt.s32.totalorder %s1238_s21, %s1232_s18 }
 0x269   : > { %p1234_p12 = pnand %p1233_p11, %p1388_p5 }
 0x26a   : > { %p1241_p2 = por %p1240_p1, %p1239_p0 }
 0x26b   : > { %p1235_p13 = pneg %p1234_p12 }
 0x26d   : > { %p1242_p3 = pnand %p1241_p2, %p1235_p13 }
 0x296   : > { %v665_v34 = vpop.permute.xlu1 %664 }
 0x298   : > { %v624_v35 = vpop.permute.xlu0 %623 }
 0x29a   : > { %v659_v36 = vpop.permute.xlu1 %658 }
 0x29c   : > { %v639_v37 = vpop.permute.xlu0 %638 }
 0x29e   : > { %v661_v38 = vpop.permute.xlu1 %660 }
 0x29f   : > { %v666_v26 = vsel %vm357_vm10, %v659_v36, %v661_v38 }
 0x2a0   : > { %v654_v39 = vpop.permute.xlu0 %653 }
 0x2a2   : > { %v618_v40 = vpop.permute.xlu1 %617 }
 0x2a4   : > { %v676_v41 = vpop.permute.xlu0 %675 }
 0x2a6   : > { %v633_v42 = vpop.permute.xlu1 %632 }
 0x2a8   : > { %v687_v43 = vpop.permute.xlu0 %686 }
 0x2aa   : > { %v648_v44 = vpop.permute.xlu1 %647 }
 0x2ac   : > { %v698_v45 = vpop.permute.xlu0 %697 }
 0x2ae   : > { %v681_v46 = vpop.permute.xlu1 %680 }
 0x2b0   : > { %v663_v47 = vpop.permute.xlu0 %662 }
 0x2b1   : > { %v667_v27 = vsel %vm357_vm10, %v661_v38, %v663_v47 }
 0x2b2   : > { %v692_v48 = vpop.permute.xlu1 %691 }
 0x2b4   : > { %v670_v49 = vpop.permute.xlu0 %669 }
 0x2b6   : > { %v620_v21 = vpop.permute.xlu1 %619 }
 0x2b7   : > { %v625_v56 = vsel %vm317_vm2, %v618_v40, %v620_v21 }
 0x2b8   : > { %v622_v50 = vpop.permute.xlu0 %621  ;;  %v714_v62 = vsel %vm409_vm5, %v1551_v11, %v625_v56  ;;  %v860_v56 = vld [vmem:[%s1728_s6] sm:$0xff] }
 0x2b9   : > { %v627_v51 = vsel %vm317_vm2, %v622_v50, %v624_v35  ;;  %v626_v57 = vsel %vm317_vm2, %v620_v21, %v622_v50  ;;  %vm882_vm2 = vcmask 31744  }
 0x2ba   : > { %v637_v52 = vpop.permute.xlu1 %636  ;;  %v720_v53 = vsel %vm409_vm5, %v604_v20, %v627_v51  ;;  %v717_v63 = vsel %vm409_vm5, %v1557_v14, %v626_v57  ;;  %v668_v14 = vsel %vm357_vm10, %v663_v47, %v665_v34 }
 0x2bb   : > { %v642_v54 = vsel %vm331_vm4, %v637_v52, %v639_v37 }
 0x2bc   : > { %v635_v55 = vpop.permute.xlu0 %634  ;;  %v726_v3 = vsel %vm419_vm7, %v720_v53, %v642_v54 }
 0x2bd   : > { %v640_v58 = vsel %vm331_vm4, %v633_v42, %v635_v55  ;;  %v641_v59 = vsel %vm331_vm4, %v635_v55, %v637_v52 }
 0x2be   : > { %v652_v60 = vpop.permute.xlu1 %651  ;;  %v722_v2 = vsel %vm419_vm7, %v714_v62, %v640_v58  ;;  %v724_v7 = vsel %vm419_vm7, %v717_v63, %v641_v59 }
 0x2bf   : > { %v657_v61 = vsel %vm344_vm3, %v652_v60, %v654_v39 }
 0x2c0   : > { %v650_v0 = vpop.permute.xlu0 %649  ;;  %v734_v1 = vsel %vm426_vm6, %v726_v3, %v657_v61 }
 0x2c1   : > { %v655_v4 = vsel %vm344_vm3, %v648_v44, %v650_v0  ;;  %v656_v6 = vsel %vm344_vm3, %v650_v0, %v652_v60  ;;  %1152 = vmatpush3.bf16.msra.mxu1 %v734_v1 }
 0x2c2   : > { %v672_v8 = vpop.permute.xlu1 %671  ;;  %v731_v9 = vsel %vm426_vm6, %v724_v7, %v656_v6  ;;  %v728_v10 = vsel %vm426_vm6, %v722_v2, %v655_v4  ;;  %1153 = vmatprep.subr.bf16.mxu1 %v1300_v17 }
 0x2c3   : > { %779 = vmatprep.subr.bf16.mxu0 %v731_v9  ;;  %v677_v16 = vsel %vm369_vm8, %v670_v49, %v672_v8 }
 0x2c4   : > { %v674_v11 = vpop.permute.xlu0 %673  ;;  %780 = vmatpush1.bf16.msra.mxu0 %v728_v10  ;;  %v738_v29 = vsel %vm409_vm5, %v666_v26, %v677_v16 }
 0x2c5   : > { %v679_v12 = vsel %vm369_vm8, %v674_v11, %v676_v41  ;;  %v678_v18 = vsel %vm369_vm8, %v672_v8, %v674_v11 }
 0x2c6   : > { %v683_v13 = vpop.permute.xlu1 %682  ;;  %v744_v19 = vsel %vm409_vm5, %v668_v14, %v679_v12  ;;  %v741_v30 = vsel %vm409_vm5, %v667_v27, %v678_v18 }
 0x2c7   : > { %v688_v22 = vsel %vm381_vm9, %v681_v46, %v683_v13  ;;  %v760_v46 = vld [vmem:[%s1726_s4] sm:$0xf] }
 0x2c8   : > { %v685_v15 = vpop.permute.xlu0 %684  ;;  %v746_v33 = vsel %vm419_vm7, %v738_v29, %v688_v22 }
 0x2c9   : > { %v690_v20 = vsel %vm381_vm9, %v685_v15, %v687_v43  ;;  %v689_v23 = vsel %vm381_vm9, %v683_v13, %v685_v15 }
 0x2ca   : > { %v750_v24 = vsel %vm419_vm7, %v744_v19, %v690_v20  ;;  %v696_v25 = vpop.permute.xlu1 %695  ;;  %v748_v35 = vsel %vm419_vm7, %v741_v30, %v689_v23 }
 0x2cb   : > { %v701_v28 = vsel %vm393_vm11, %v696_v25, %v698_v45 }
 0x2cc   : > { %v694_v31 = vpop.permute.xlu0 %693  ;;  %v758_v32 = vsel %vm426_vm6, %v750_v24, %v701_v28 }
 0x2cd   : > { %v699_v5 = vsel %vm393_vm11, %v692_v48, %v694_v31  ;;  %v700_v34 = vsel %vm393_vm11, %v694_v31, %v696_v25  ;;  %1154 = vmatpush3.bf16.msra.mxu1 %v758_v32 }
 0x2ce   : > { %v703_v36 = vpop.permute.xlu1 %702  ;;  %v755_v37 = vsel %vm426_vm6, %v748_v35, %v700_v34  ;;  %v752_v38 = vsel %vm426_vm6, %v746_v33, %v699_v5  ;;  %1155 = vmatprep.subr.bf16.mxu1 %v1300_v17 }
 0x2cf   : > { %781 = vmatprep.subr.bf16.mxu0 %v755_v37 }
 0x2d0   : > { %v705_v39 = vpop.permute.xlu0 %704  ;;  %782 = vmatpush1.bf16.msra.mxu0 %v752_v38 }
 0x2d1   : > { %v710_v40 = vsel %vm405_vm12, %v703_v36, %v705_v39 }
 0x2d2   : > { %v707_v41 = vpop.permute.xlu1 %706  ;;  %v771_v43 = vsel %vm409_vm5, %v710_v40, 0 }
 0x2d3   : > { %v711_v42 = vsel %vm405_vm12, %v705_v39, %v707_v41 }
 0x2d4   : > { %v709_v44 = vpop.permute.xlu0 %708  ;;  %1119 = vmatprep.subr.msk.bf16.mxu0 %vm409_vm5, %v711_v42 }
 0x2d5   : > { %v712_v45 = vsel %vm405_vm12, %v707_v41, %v709_v44  ;;  %784 = vmatpush1.bf16.msra.mxu0 %v771_v43 }
 0x2d6   : > { %v777_v47 = vsel %vm409_vm5, %v712_v45, 0  ;;  %v1223_v48 = vpop.permute.xlu1 %1222 }
 0x2d7   : > { %1156 = vmatpush3.bf16.msra.mxu1 %v777_v47  ;;  %v1225_v49 = vunpack.i.h.bf16 %v1223_v48  ;;  %v1224_v21 = vunpack.i.l.bf16 %v1223_v48 }
 0x2d8   : > { %v1228_v50 = vpop.permute.xlu0 %1227  ;;  %1120 = vmatmul.mubr.msk.bf16.vlgmr.msra.gmra.mrb[4].mxu0 %vm467_vm13, %v760_v46  ;;  %1161 = vmatprep.subr.mxu1 %v1300_v17 }
 0x2d9   : > { %v1230_v51 = vunpack.i.h.bf16 %v1228_v50  ;;  %v1229_v52 = vunpack.i.l.bf16 %v1228_v50  ;;  %v880_v53 = vsel %vm357_vm10, %v1224_v21, %v1225_v49  ;;  %956 = vmatprep.mubr.f32.mxu0 %v1300_v17 }
 0x2da   : > { %1158 = vmatmul.mubr.msk.bf16.vlgmr.msra.gmra.mrb[4].mxu1 %vm467_vm13, %v760_v46  ;;  %1122 = vmatprep.subr.msk.mxu0 %vm419_vm7, %v880_v53 }
 0x2db   : > { %v879_v54 = vsel %vm357_vm10, %v1229_v52, %v1224_v21  ;;  %v881_v55 = vsel %vm357_vm10, %v1225_v49, %v1230_v51  ;;  %1163 = vmatprep.mubr.msk.f32.mxu1 %vm1733_vm1, %v1300_v17 }
 0x2dc   : > { %1123 = vmatpush1.msk.msra.mxu0 %vm419_vm7, %v879_v54  ;;  %1162 = vmatpush3.msk.msra.mxu1 %vm419_vm7, %v881_v55 }
 0x2e0   : > { %1124 = vmatmul.mubr.msk.f32.vlgmr.msra.gmra.mrb[8].mxu0 %vm882_vm2, %v860_v56 }
 0x2e2   : > { %1164 = vmatmul.mubr.msk.f32.vlgmr.msra.gmra.mrb[8].mxu1 %vm882_vm2, %v860_v56 }
 0x2e7   : > { %v765_v58 = vpop.permute.xlu1 %764 }
 0x3ab   : > { %v813_v57 = vpop.f32.mrb[4].mxu0 }
 0x3ac   : > { %v815_v59 = vpop.f32.mrb[5].mxu0  ;;  %v814_v62 = vadd.f32 %v813_v57, %v765_v58 }
 0x3ad   : > { %v854_v60 = vpop.f32.mrb[4].mxu1  ;;  %v817_v17 = vpop.f32.mrb[6].mxu0  ;;  %v816_v0 = vadd.f32 %v815_v59, %v765_v58 }
 0x3ae   : > { %v1159_v3 = vpop.f32.mrb[5].mxu1  ;;  %v818_v61 = vpop.f32.mrb[7].mxu0  ;;  %v855_v1 = vadd.f32 %v854_v60, %v765_v58  ;;  %v863_v4 = vmul.f32 0.1, %v814_v62 }
 0x3af   : > { %v857_v63 = vpop.f32.mrb[6].mxu1  ;;  %v864_v6 = vmul.f32 0.1, %v816_v0 }
 0x3b0   : > { %v1160_v2 = vpop.f32.mrb[7].mxu1  ;;  %v865_v8 = vmul.f32 0.1, %v855_v1 }
 0x3b3   : > { %v958_v7 = vpop.f32.mrb[8].mxu0 }
 0x3b4   : > { %v959_v9 = vadd.f32 %v958_v7, %v863_v4  ;;  %v960_v10 = vpop.f32.mrb[9].mxu0 }
 0x3b5   : > { %v961_v11 = vadd.f32 %v960_v10, %v864_v6  ;;  %v1029_v12 = vpop.f32.mrb[8].mxu1 }
 0x3b6   : > { %1033 = vst [vmem:[%s271_s14] sm:$0xff] %v959_v9  ;;  %v1030_v13 = vadd.f32 %v1029_v12, %v865_v8  ;;  %v1165_v14 = vpop.f32.mrb[9].mxu1 }
 0x3b7   : > { %1034 = vst [vmem:[%s271_s14 + $0x8] sm:$0xff] %v961_v11 }
 0x3b8   : > { %1035 = vst [vmem:[%s271_s14 + $0x10] sm:$0xff] %v1030_v13 }
 0x3b9   : > { %1245 = shalt.err (!%p1242_p3)
}
 0x3ba   : > { %s1246_s22 = scalar_lea.hbm %s1678_s9, 384  ;;  %s1250_s8 = scalar_lea.hbm %s1729_s7, 768 }
 0x3bb   : > { %p1247_p4 = scmp.ne.s32.totalorder %s1678_s9, %s1246_s22  ;;  %p1251_p9 = scmp.lt.u32.totalorder %s1678_s9, %s1729_s7 }
 0x3bc   : > { %p1252_p10 = scmp.lt.u32.totalorder %s1250_s8, %s1246_s22  ;;  %p1254_p12 = scmp.lt.u32.totalorder %s1246_s22, %s1678_s9 }
 0x3bd   : > { %p1248_p7 = pnand %p1247_p4, %p1388_p5 }
 0x3be   : > { %p1253_p11 = por %p1252_p10, %p1251_p9 }
 0x3bf   : > { %p1249_p8 = pneg %p1248_p7 }
 0x3c0   : > { %p1255_p13 = por %p1254_p12, %p1253_p11 }
 0x3c2   : > { %p1256_p0 = pnand %p1255_p13, %p1249_p8 }
 0x3c4   : > { %1259 = shalt.err (!%p1256_p0)
}
 0x3c5   : > { %1168 = dma.vmem_to_hbm [thread:$0]  (%p1388_p5), %s1680_s15, 384, %s1678_s9, %s1037_s28  }
 0x3c6 PF: > { %p1174_p1 = scmp.ge.s32.totalorder %s1294_s27, 2  ;;  %s1063_s16 = sand.u32 1, %s1282_s24  }
 0x3c7   : > { %s1064_s17 = scalar_lea.sflag [#allocation3], %s1063_s16 }
 0x3c8   : > { %p1171_p2 = pnand %p1174_p1, %p1392_p6 }
 0x3ca   : > { %1277 = dma.done.wait (!%p1171_p2), %s1064_s17, 384  }
 0x3cb   : > { %1279 = vsyncadd (!%p1171_p2), %s1064_s17, 4294966912  ;;  %p17_p3 = scmp.ge.s32.totalorder %s1375_s30, 4   ;;  %s1734_s24 = smov %s1286_s25 }
 0x3cc   : > { %s1735_s25 = smov %s1290_s26  ;;  %s1736_s26 = smov %s1386_s10 }
 0x3cd   : > { %s1737_s27 = smov %s1375_s30  ;;  %19 = sbr.rel (!%p17_p3) target bundleno = 3 (0x3), region = 83 }
 0x3d4   :  { %1069 = vsyncpa [#allocation3], 1 }
 0x3d5   :  { %1071 = vsyncpa [#allocation3 + $0x1], 1 }

</bundles_post_ra>
